<compile_context>
chip_gen: v6e
topology: v6e:2x2x1
jax: 0.10.0
libtpu: 0.0.40
codegen_flags: <defaults>
</compile_context>

<pallas_src>
import functools

import jax
import jax.numpy as jnp
from jax.experimental import pallas as pl
from jax.experimental.pallas import tpu as pltpu


def _round_up(a, b):
    return (a + b - 1) // b * b


# ----------------------------- kernels ------------------------------------- #

def _gsl_kernel_er(x_ref, w_ref, b_ref, e_ref, r_ref, o_ref, *, head_num, ho_pad):
    """Gated-sum kernel using tiny 0/1 expand/reduce matmuls (ragged / small O)."""
    H, HOp = head_num, ho_pad

    x = x_ref[...]                                                  # bf16 tile (tm, D)
    # One fused MXU pass: cols [0:HOp) = experts (zero-padded), [HOp:HOp+H) = gate.
    y = jnp.dot(x, w_ref[...], preferred_element_type=jnp.float32) + b_ref[...]

    # Softmax over the H real gate columns (slice starts on a 128-lane boundary).
    s = y[:, HOp:HOp + H]
    s = s - jnp.max(s, axis=-1, keepdims=True)
    es = jnp.exp(s)
    g = es * pl.reciprocal(jnp.sum(es, axis=-1, keepdims=True), approx=True)  # (tm, H)

    # Gated sum over heads via constant bf16 0/1 matrices:
    #   g_expand[m, h*O+o] = g[m, h]     (g @ E)
    #   out[m, o] = sum_h (eo * g_expand)[m, h*O+o]   ((..) @ R); padded cols -> 0.
    eo = y[:, :HOp]                                                 # lane-aligned slab
    g_expand = jnp.dot(g.astype(e_ref.dtype), e_ref[...],
                       preferred_element_type=jnp.float32)          # (tm, HOp)
    prod = (eo * g_expand).astype(r_ref.dtype)
    out = jnp.dot(prod, r_ref[...], preferred_element_type=jnp.float32)
    o_ref[...] = out.astype(o_ref.dtype)


def _gsl_kernel_slice(x_ref, w_ref, b_ref, o_ref, *, head_num, out_dim, ho_pad):
    """Gated-sum kernel using per-head lane-aligned slices (O % 128 == 0)."""
    H, O, HOp = head_num, out_dim, ho_pad

    x = x_ref[...]
    y = jnp.dot(x, w_ref[...], preferred_element_type=jnp.float32) + b_ref[...]

    s = y[:, HOp:HOp + H]
    s = s - jnp.max(s, axis=-1, keepdims=True)
    es = jnp.exp(s)
    g = es * pl.reciprocal(jnp.sum(es, axis=-1, keepdims=True), approx=True)  # (tm, H)

    out = jnp.zeros((y.shape[0], O), jnp.float32)
    for h in range(H):                        # static unroll; slices are lane-aligned
        out = out + g[:, h:h + 1] * y[:, h * O:(h + 1) * O]
    o_ref[...] = out.astype(o_ref.dtype)


# ------------------------- parameter preparation --------------------------- #

def prepare_gated_sum_linear_params(gate_w, gate_b, expert_w, expert_b,
                                    compute_dtype=jnp.bfloat16):
    """One-time parameter prep (transposes / fusion / lane padding off the hot path).

    gate_w: (H, D), gate_b: (H,)            -- torch nn.Linear(D, H) layout
    expert_w: (H, O, D), expert_b: (H, O)   -- stacked torch nn.Linear(D, O) layouts
    """
    H, O, D = expert_w.shape
    HO = H * O
    use_er = (O % 128 != 0)                       # E/R path for ragged / small O
    HO_pad = _round_up(HO, 128) if use_er else HO
    Hg_pad = _round_up(H, 128)                    # gate column group, lane-aligned tail

    # Expert slab: W[d, h*O + o] = expert_w[h, o, d]  ->  x @ W == x @ We[h].T per head.
    we = jnp.transpose(expert_w, (2, 0, 1)).reshape(D, HO)
    we = jnp.pad(we, ((0, 0), (0, HO_pad - HO)))
    wg = jnp.pad(gate_w.T, ((0, 0), (0, Hg_pad - H)))                   # (D, Hg_pad)
    w_all = jnp.concatenate([we, wg], axis=1).astype(compute_dtype)     # (D, N_pad)

    be = jnp.pad(expert_b.reshape(1, HO), ((0, 0), (0, HO_pad - HO)))
    bg = jnp.pad(gate_b.reshape(1, H), ((0, 0), (0, Hg_pad - H)))
    b_all = jnp.concatenate([be, bg], axis=1).astype(jnp.float32)       # (1, N_pad)

    params = dict(w_all=w_all, b_all=b_all, head_num=int(H), out_dim=int(O),
                  ho_pad=int(HO_pad), use_er=bool(use_er))

    if use_er:
        lanes = jnp.arange(HO_pad)
        valid = lanes < HO                                              # padded -> 0
        expand = (lanes[None, :] // O == jnp.arange(H)[:, None]) & valid[None, :]
        reduce_ = ((lanes[:, None] % O) == jnp.arange(O)[None, :]) & valid[:, None]
        params["expand"] = expand.astype(compute_dtype)                 # (H, HO_pad)
        params["reduce"] = reduce_.astype(compute_dtype)                # (HO_pad, O)
    return params


# ----------------------------- tiling logic --------------------------------- #

def _vmem_budget():
    try:
        cap = int(pltpu.get_tpu_info().vmem_capacity_bytes)
    except Exception:
        cap = 64 * 1024 * 1024          # conservative: v7x per-TensorCore VMEM
    budget = min(int(cap * 0.70), 96 * 1024 * 1024)
    limit = min(int(cap * 0.85), 112 * 1024 * 1024)
    return budget, limit


def _choose_token_tile(M, D, O, n_pad, ho_pad, H, use_er, budget):
    # Resident (single-buffered) operands.
    resident = D * n_pad * 2 + n_pad * 4
    if use_er:
        resident += H * ho_pad * 2 + ho_pad * O * 2

    def fits(tm):
        per_tile = 2 * tm * D * 2 + 2 * tm * O * 4          # double-buffered x / out
        interm = tm * n_pad * 4                              # y (f32)
        interm += 3 * tm * (ho_pad if use_er else O) * 4     # eo / g_expand / product
        return resident + per_tile + interm <= budget

    # Keep >= ~4 grid steps when M allows (feeds both v7x TensorCores).
    cap = max(8, _round_up(pl.cdiv(M, 4), 8))
    tm = 1024
    while tm > 8 and (not fits(tm) or tm > cap):
        tm //= 2
    return max(8, tm)


# ------------------------------- wrapper ------------------------------------ #

def gated_sum_linear(x, params):
    """x: (B, S, D); params from prepare_gated_sum_linear_params()."""
    H, O = params["head_num"], params["out_dim"]
    HO_pad, use_er = params["ho_pad"], params["use_er"]
    w_all, b_all = params["w_all"], params["b_all"]

    B, S, D = x.shape
    N_pad = w_all.shape[1]
    M = B * S
    out_dtype = x.dtype

    budget, vmem_limit = _vmem_budget()
    tm = _choose_token_tile(M, D, O, N_pad, HO_pad, H, use_er, budget)
    Mpad = _round_up(M, tm)

    # Stream tokens in bf16: halves the HBM bytes of the only pipelined input.
    x2 = x.reshape(M, D).astype(w_all.dtype)
    if Mpad != M:
        x2 = jnp.pad(x2, ((0, Mpad - M), (0, 0)))

    if use_er:
        kernel = functools.partial(_gsl_kernel_er, head_num=H, ho_pad=HO_pad)
        const_args = (w_all, b_all, params["expand"], params["reduce"])
        red_flops = 2 * Mpad * H * HO_pad + 2 * Mpad * HO_pad * O
    else:
        kernel = functools.partial(_gsl_kernel_slice, head_num=H, out_dim=O,
                                   ho_pad=HO_pad)
        const_args = (w_all, b_all)
        red_flops = 2 * Mpad * H * O

    flops = 2 * Mpad * D * N_pad + red_flops
    bytes_accessed = (x2.size * x2.dtype.itemsize
                      + sum(int(a.size) * a.dtype.itemsize for a in const_args)
                      + Mpad * O * jnp.dtype(out_dtype).itemsize)
    cost = pl.CostEstimate(flops=int(flops), transcendentals=int(Mpad * H),
                           bytes_accessed=int(bytes_accessed))

    def _const_spec(shape, buffered):
        if buffered:
            # Single-buffer resident operands (constant block index across the grid).
            return pl.BlockSpec(shape, lambda i: (0,) * len(shape),
                                pipeline_mode=pl.Buffered(1))
        return pl.BlockSpec(shape, lambda i: (0,) * len(shape))

    def _run(buffered):
        in_specs = [pl.BlockSpec((tm, D), lambda i: (i, 0))]         # pipelined x tile
        in_specs += [_const_spec(a.shape, buffered) for a in const_args]
        return pl.pallas_call(
            kernel,
            out_shape=jax.ShapeDtypeStruct((Mpad, O), out_dtype),
            grid=(Mpad // tm,),
            in_specs=in_specs,
            out_specs=pl.BlockSpec((tm, O), lambda i: (i, 0)),
            compiler_params=pltpu.CompilerParams(
                dimension_semantics=("parallel",),    # shard grid across v7x TCs
                vmem_limit_bytes=vmem_limit),
            cost_estimate=cost,
        )(x2, *const_args)

    try:
        out2 = _run(True)
    except Exception:
        # pipeline_mode=pl.Buffered(1) unsupported on this jax version -> default
        # (double-buffered) specs; identical numerics, slightly higher VMEM use.
        out2 = _run(False)

    if Mpad != M:
        out2 = out2[:M]
    return out2.reshape(B, S, O)


# ------------------------------ reference ----------------------------------- #

def _reference(x, gate_w, gate_b, expert_w, expert_b):
    scores = jnp.einsum("bsd,hd->bsh", x, gate_w) + gate_b
    gw = jax.nn.softmax(scores, axis=-1)                          # (B, S, H)
    eo = jnp.einsum("bsd,hod->bsho", x, expert_w) + expert_b      # (B, S, H, O)
    return jnp.einsum("bsh,bsho->bso", gw, eo)


if __name__ == "__main__":
    # Small shapes consistent with the module: x is (batch, seq, input_dim).
    B, S, D, H, O = 2, 8, 32, 4, 32

    key = jax.random.PRNGKey(0)
    kx, kg, kgb, ke, keb = jax.random.split(key, 5)

    x = jax.random.normal(kx, (B, S, D), dtype=jnp.float32)
    # nn.Linear-like shapes: gate (H, D)+(H,), experts Linear(D, O) stacked (H, O, D)+(H, O).
    gate_w = jax.random.normal(kg, (H, D), dtype=jnp.float32) * 0.1
    gate_b = jax.random.normal(kgb, (H,), dtype=jnp.float32) * 0.1
    expert_w = jax.random.normal(ke, (H, O, D), dtype=jnp.float32) * 0.1
    expert_b = jax.random.normal(keb, (H, O), dtype=jnp.float32) * 0.1

    params = prepare_gated_sum_linear_params(gate_w, gate_b, expert_w, expert_b)

    out = gated_sum_linear(x, params)
    out = jax.block_until_ready(out)

    ref = _reference(x, gate_w, gate_b, expert_w, expert_b)
    assert out.shape == (B, S, O)
    # bf16 MXU operands + approximate reciprocal in the softmax denominator ->
    # looser tolerance than pure f32 (deliberate precision trade-off).
    assert jnp.allclose(out, ref, atol=2e-2, rtol=2e-2), "mismatch vs reference"

    print("KERNEL_OK")
</pallas_src>

<mosaic_0001>
module attributes {stable_mosaic.version = 11 : i64} {
  func.func @_gsl_kernel_er(%arg0: i32, %arg1: memref<8x32xbf16, #tpu.memory_space<vmem>>, %arg2: memref<32x256xbf16, #tpu.memory_space<vmem>>, %arg3: memref<1x256xf32, #tpu.memory_space<vmem>>, %arg4: memref<4x128xbf16, #tpu.memory_space<vmem>>, %arg5: memref<128x32xbf16, #tpu.memory_space<vmem>>, %arg6: memref<8x32xf32, #tpu.memory_space<vmem>>) attributes {dimension_semantics = [#tpu.dimension_semantics<parallel>], iteration_bounds = array<i64: 2>, scalar_prefetch = 0 : i64, scratch_operands = 0 : i64, tpu.core_type = #tpu.core_type<tc>, window_params = [{transform_indices = @transform_0, window_bounds = array<i64: 8, 32>}, {pipeline_mode = #tpu.pipeline_mode<synchronous>, transform_indices = @transform_1, window_bounds = array<i64: 32, 256>}, {pipeline_mode = #tpu.pipeline_mode<synchronous>, transform_indices = @transform_2, window_bounds = array<i64: 1, 256>}, {pipeline_mode = #tpu.pipeline_mode<synchronous>, transform_indices = @transform_3, window_bounds = array<i64: 4, 128>}, {pipeline_mode = #tpu.pipeline_mode<synchronous>, transform_indices = @transform_4, window_bounds = array<i64: 128, 32>}, {transform_indices = @transform_5, window_bounds = array<i64: 8, 32>}]} {
    %c0 = arith.constant 0 : index
    %c0_0 = arith.constant 0 : index
    %0 = vector.load %arg1[%c0, %c0_0] : memref<8x32xbf16, #tpu.memory_space<vmem>>, vector<8x32xbf16>
    %c0_1 = arith.constant 0 : index
    %c0_2 = arith.constant 0 : index
    %1 = vector.load %arg2[%c0_1, %c0_2] : memref<32x256xbf16, #tpu.memory_space<vmem>>, vector<32x256xbf16>
    %cst = arith.constant dense<0.000000e+00> : vector<8x256xf32>
    %2 = tpu.matmul %0, %1, %cst {dimension_numbers = #tpu.dot_dimension_numbers<[1], [0], [0], [1], [0, 0, 1, 1], [], []>} : vector<8x32xbf16>, vector<32x256xbf16>, vector<8x256xf32> -> vector<8x256xf32>
    %c0_3 = arith.constant 0 : index
    %c0_4 = arith.constant 0 : index
    %3 = vector.load %arg3[%c0_3, %c0_4] : memref<1x256xf32, #tpu.memory_space<vmem>>, vector<1x256xf32>
    %4 = vector.broadcast %3 : vector<1x256xf32> to vector<8x256xf32>
    %5 = arith.addf %2, %4 : vector<8x256xf32>
    %6 = vector.extract_strided_slice %5 {offsets = [0, 128], sizes = [8, 4], strides = [1, 1]} : vector<8x256xf32> to vector<8x4xf32>
    %cst_5 = arith.constant dense<0xFF800000> : vector<8xf32>
    %7 = vector.multi_reduction <maximumf>, %6, %cst_5 [1] : vector<8x4xf32> to vector<8xf32>
    %8 = vector.shape_cast %7 : vector<8xf32> to vector<8x1xf32>
    %9 = vector.broadcast %8 : vector<8x1xf32> to vector<8x4xf32>
    %10 = arith.subf %6, %9 : vector<8x4xf32>
    %11 = math.exp %10 : vector<8x4xf32>
    %cst_6 = arith.constant dense<0.000000e+00> : vector<8xf32>
    %12 = vector.multi_reduction <add>, %11, %cst_6 [1] : vector<8x4xf32> to vector<8xf32>
    %13 = vector.shape_cast %12 : vector<8xf32> to vector<8x1xf32>
    %14 = tpu.reciprocal %13 {approx = true} : vector<8x1xf32> -> vector<8x1xf32>
    %15 = vector.broadcast %14 : vector<8x1xf32> to vector<8x4xf32>
    %16 = arith.mulf %11, %15 : vector<8x4xf32>
    %17 = vector.extract_strided_slice %5 {offsets = [0, 0], sizes = [8, 128], strides = [1, 1]} : vector<8x256xf32> to vector<8x128xf32>
    %18 = arith.truncf %16 : vector<8x4xf32> to vector<8x4xbf16>
    %c0_7 = arith.constant 0 : index
    %c0_8 = arith.constant 0 : index
    %19 = vector.load %arg4[%c0_7, %c0_8] : memref<4x128xbf16, #tpu.memory_space<vmem>>, vector<4x128xbf16>
    %cst_9 = arith.constant dense<0.000000e+00> : vector<8x128xf32>
    %20 = tpu.matmul %18, %19, %cst_9 {dimension_numbers = #tpu.dot_dimension_numbers<[1], [0], [0], [1], [0, 0, 1, 1], [], []>} : vector<8x4xbf16>, vector<4x128xbf16>, vector<8x128xf32> -> vector<8x128xf32>
    %21 = arith.mulf %17, %20 : vector<8x128xf32>
    %22 = arith.truncf %21 : vector<8x128xf32> to vector<8x128xbf16>
    %c0_10 = arith.constant 0 : index
    %c0_11 = arith.constant 0 : index
    %23 = vector.load %arg5[%c0_10, %c0_11] : memref<128x32xbf16, #tpu.memory_space<vmem>>, vector<128x32xbf16>
    %cst_12 = arith.constant dense<0.000000e+00> : vector<8x32xf32>
    %24 = tpu.matmul %22, %23, %cst_12 {dimension_numbers = #tpu.dot_dimension_numbers<[1], [0], [0], [1], [0, 0, 1, 1], [], []>} : vector<8x128xbf16>, vector<128x32xbf16>, vector<8x32xf32> -> vector<8x32xf32>
    %c0_13 = arith.constant 0 : index
    %c0_14 = arith.constant 0 : index
    %25 = vector.load %arg6[%c0_13, %c0_14] : memref<8x32xf32, #tpu.memory_space<vmem>>, vector<8x32xf32>
    tpu.vector_store %arg6[%c0_13, %c0_14], %24 {strides = array<i32>} : memref<8x32xf32, #tpu.memory_space<vmem>>, vector<8x32xf32>,
    return
  }
  func.func @transform_0(%arg0: i32) -> (i32, i32) {
    %c0_i32 = arith.constant 0 : i32
    %c0_i32_0 = arith.constant 0 : i32
    return %arg0, %c0_i32 : i32, i32
  }
  func.func @transform_1(%arg0: i32) -> (i32, i32) {
    %c0_i32 = arith.constant 0 : i32
    %c0_i32_0 = arith.constant 0 : i32
    %c0_i32_1 = arith.constant 0 : i32
    return %c0_i32, %c0_i32_0 : i32, i32
  }
  func.func @transform_2(%arg0: i32) -> (i32, i32) {
    %c0_i32 = arith.constant 0 : i32
    %c0_i32_0 = arith.constant 0 : i32
    %c0_i32_1 = arith.constant 0 : i32
    return %c0_i32, %c0_i32_0 : i32, i32
  }
  func.func @transform_3(%arg0: i32) -> (i32, i32) {
    %c0_i32 = arith.constant 0 : i32
    %c0_i32_0 = arith.constant 0 : i32
    %c0_i32_1 = arith.constant 0 : i32
    return %c0_i32, %c0_i32_0 : i32, i32
  }
  func.func @transform_4(%arg0: i32) -> (i32, i32) {
    %c0_i32 = arith.constant 0 : i32
    %c0_i32_0 = arith.constant 0 : i32
    %c0_i32_1 = arith.constant 0 : i32
    return %c0_i32, %c0_i32_0 : i32, i32
  }
  func.func @transform_5(%arg0: i32) -> (i32, i32) {
    %c0_i32 = arith.constant 0 : i32
    %c0_i32_0 = arith.constant 0 : i32
    return %arg0, %c0_i32 : i32, i32
  }
}

module attributes {stable_mosaic.version = 11 : i64} {
  func.func @_gsl_kernel_er(%arg0: i32, %arg1: memref<8x32xbf16, #tpu.memory_space<vmem>>, %arg2: memref<32x256xbf16, #tpu.memory_space<vmem>>, %arg3: memref<1x256xf32, #tpu.memory_space<vmem>>, %arg4: memref<4x128xbf16, #tpu.memory_space<vmem>>, %arg5: memref<128x32xbf16, #tpu.memory_space<vmem>>, %arg6: memref<8x32xf32, #tpu.memory_space<vmem>>) attributes {dimension_semantics = [#tpu.dimension_semantics<parallel>], iteration_bounds = array<i64: 2>, scalar_prefetch = 0 : i64, scratch_operands = 0 : i64, tpu.core_type = #tpu.core_type<tc>, window_params = [{transform_indices = @transform_0, window_bounds = array<i64: 8, 32>}, {pipeline_mode = #tpu.pipeline_mode<synchronous>, transform_indices = @transform_1, window_bounds = array<i64: 32, 256>}, {pipeline_mode = #tpu.pipeline_mode<synchronous>, transform_indices = @transform_2, window_bounds = array<i64: 1, 256>}, {pipeline_mode = #tpu.pipeline_mode<synchronous>, transform_indices = @transform_3, window_bounds = array<i64: 4, 128>}, {pipeline_mode = #tpu.pipeline_mode<synchronous>, transform_indices = @transform_4, window_bounds = array<i64: 128, 32>}, {transform_indices = @transform_5, window_bounds = array<i64: 8, 32>}]} {
    %c0 = arith.constant 0 : index
    %c0_0 = arith.constant 0 : index
    %0 = vector.load %arg1[%c0, %c0_0] : memref<8x32xbf16, #tpu.memory_space<vmem>>, vector<8x32xbf16>
    %c0_1 = arith.constant 0 : index
    %c0_2 = arith.constant 0 : index
    %1 = vector.load %arg2[%c0_1, %c0_2] : memref<32x256xbf16, #tpu.memory_space<vmem>>, vector<32x256xbf16>
    %cst = arith.constant dense<0.000000e+00> : vector<8x256xf32>
    %2 = tpu.matmul %0, %1, %cst {dimension_numbers = #tpu.dot_dimension_numbers<[1], [0], [0], [1], [0, 0, 1, 1], [], []>} : vector<8x32xbf16>, vector<32x256xbf16>, vector<8x256xf32> -> vector<8x256xf32>
    %c0_3 = arith.constant 0 : index
    %c0_4 = arith.constant 0 : index
    %3 = vector.load %arg3[%c0_3, %c0_4] : memref<1x256xf32, #tpu.memory_space<vmem>>, vector<1x256xf32>
    %4 = vector.broadcast %3 : vector<1x256xf32> to vector<8x256xf32>
    %5 = arith.addf %2, %4 : vector<8x256xf32>
    %6 = vector.extract_strided_slice %5 {offsets = [0, 128], sizes = [8, 4], strides = [1, 1]} : vector<8x256xf32> to vector<8x4xf32>
    %cst_5 = arith.constant dense<0xFF800000> : vector<8xf32>
    %7 = vector.multi_reduction <maximumf>, %6, %cst_5 [1] : vector<8x4xf32> to vector<8xf32>
    %8 = vector.shape_cast %7 : vector<8xf32> to vector<8x1xf32>
    %9 = vector.broadcast %8 : vector<8x1xf32> to vector<8x4xf32>
    %10 = arith.subf %6, %9 : vector<8x4xf32>
    %11 = math.exp %10 : vector<8x4xf32>
    %cst_6 = arith.constant dense<0.000000e+00> : vector<8xf32>
    %12 = vector.multi_reduction <add>, %11, %cst_6 [1] : vector<8x4xf32> to vector<8xf32>
    %13 = vector.shape_cast %12 : vector<8xf32> to vector<8x1xf32>
    %14 = tpu.reciprocal %13 {approx = true} : vector<8x1xf32> -> vector<8x1xf32>
    %15 = vector.broadcast %14 : vector<8x1xf32> to vector<8x4xf32>
    %16 = arith.mulf %11, %15 : vector<8x4xf32>
    %17 = vector.extract_strided_slice %5 {offsets = [0, 0], sizes = [8, 128], strides = [1, 1]} : vector<8x256xf32> to vector<8x128xf32>
    %18 = arith.truncf %16 : vector<8x4xf32> to vector<8x4xbf16>
    %c0_7 = arith.constant 0 : index
    %c0_8 = arith.constant 0 : index
    %19 = vector.load %arg4[%c0_7, %c0_8] : memref<4x128xbf16, #tpu.memory_space<vmem>>, vector<4x128xbf16>
    %cst_9 = arith.constant dense<0.000000e+00> : vector<8x128xf32>
    %20 = tpu.matmul %18, %19, %cst_9 {dimension_numbers = #tpu.dot_dimension_numbers<[1], [0], [0], [1], [0, 0, 1, 1], [], []>} : vector<8x4xbf16>, vector<4x128xbf16>, vector<8x128xf32> -> vector<8x128xf32>
    %21 = arith.mulf %17, %20 : vector<8x128xf32>
    %22 = arith.truncf %21 : vector<8x128xf32> to vector<8x128xbf16>
    %c0_10 = arith.constant 0 : index
    %c0_11 = arith.constant 0 : index
    %23 = vector.load %arg5[%c0_10, %c0_11] : memref<128x32xbf16, #tpu.memory_space<vmem>>, vector<128x32xbf16>
    %cst_12 = arith.constant dense<0.000000e+00> : vector<8x32xf32>
    %24 = tpu.matmul %22, %23, %cst_12 {dimension_numbers = #tpu.dot_dimension_numbers<[1], [0], [0], [1], [0, 0, 1, 1], [], []>} : vector<8x128xbf16>, vector<128x32xbf16>, vector<8x32xf32> -> vector<8x32xf32>
    %c0_13 = arith.constant 0 : index
    %c0_14 = arith.constant 0 : index
    %25 = vector.load %arg6[%c0_13, %c0_14] : memref<8x32xf32, #tpu.memory_space<vmem>>, vector<8x32xf32>
    tpu.vector_store %arg6[%c0_13, %c0_14], %24 {strides = array<i32>} : memref<8x32xf32, #tpu.memory_space<vmem>>, vector<8x32xf32>,
    return
  }
  func.func @transform_0(%arg0: i32) -> (i32, i32) {
    %c0_i32 = arith.constant 0 : i32
    %c0_i32_0 = arith.constant 0 : i32
    return %arg0, %c0_i32 : i32, i32
  }
  func.func @transform_1(%arg0: i32) -> (i32, i32) {
    %c0_i32 = arith.constant 0 : i32
    %c0_i32_0 = arith.constant 0 : i32
    %c0_i32_1 = arith.constant 0 : i32
    return %c0_i32, %c0_i32_0 : i32, i32
  }
  func.func @transform_2(%arg0: i32) -> (i32, i32) {
    %c0_i32 = arith.constant 0 : i32
    %c0_i32_0 = arith.constant 0 : i32
    %c0_i32_1 = arith.constant 0 : i32
    return %c0_i32, %c0_i32_0 : i32, i32
  }
  func.func @transform_3(%arg0: i32) -> (i32, i32) {
    %c0_i32 = arith.constant 0 : i32
    %c0_i32_0 = arith.constant 0 : i32
    %c0_i32_1 = arith.constant 0 : i32
    return %c0_i32, %c0_i32_0 : i32, i32
  }
  func.func @transform_4(%arg0: i32) -> (i32, i32) {
    %c0_i32 = arith.constant 0 : i32
    %c0_i32_0 = arith.constant 0 : i32
    %c0_i32_1 = arith.constant 0 : i32
    return %c0_i32, %c0_i32_0 : i32, i32
  }
  func.func @transform_5(%arg0: i32) -> (i32, i32) {
    %c0_i32 = arith.constant 0 : i32
    %c0_i32_0 = arith.constant 0 : i32
    return %arg0, %c0_i32 : i32, i32
  }
}

</mosaic_0001>

<bundles_post_ra>
// kernel: tpu_custom_call.1
= control target key start
LH: loop header
LB: loop body
LE: loop exit
PB: predicated region body
PF: predicated region fallthrough
CT: control target
= control target key end

     0   :  { %10 = vsyncpa [#allocation3], 0  ;;  %s907_s0 = inlined_call_operand.vmem [shape: bf16[16,32], index: 0, kind: input, shape index: {}]   ;;  %s908_s1 = inlined_call_operand.vmem [shape: bf16[32,256], index: 1, kind: input, shape index: {}]   ;;  %s909_s2 = inlined_call_operand.vmem [shape: f32[1,256], index: 2, kind: input, shape index: {}]   ;;  %s910_s3 = inlined_call_operand.vmem [shape: bf16[4,128], index: 3, kind: input, shape index: {}]   ;;  %s911_s4 = inlined_call_operand.vmem [shape: bf16[128,32], index: 4, kind: input, shape index: {}]   ;;  %s912_s5 = inlined_call_operand.hbm [shape: f32[16,32], index: 5, kind: output, shape index: {}]  }
   0x1   :  { %12 = vsyncpa [#allocation3 + $0x1], 0  ;;  %s761_s18 = smov 0   ;;  %s763_s19 = smov 0  }
   0x2   :  { %s765_s20 = smov 0   ;;  %s767_s21 = smov 0  }
   0x3 LB: > { %s782_s22 = sadd.s32 4294967295, %s725_s21   ;;  %s544_s23 = sadd.s32 4294967294, %s725_s21   ;;  %s725_s21 = sphi %s767_s21, %s918_s21   ;;  %s721_s20 = sphi %s765_s20, %s917_s20   ;;  %s717_s19 = sphi %s763_s19, %s916_s19   ;;  %s713_s18 = sphi %s761_s18, %s915_s18  }
   0x4   : > { %s786_s24 = sadd.s32 1, %s725_s21   ;;  %s135_s25 = sadd.s32 1, %s721_s20 }
   0x5   : > { %s132_s26 = ssub.s32 %s725_s21, %s786_s24  ;;  %p145_p0 = scmp.ne.s32.totalorder %s721_s20, %s717_s19 }
   0x6   : > { %p133_p1 = scmp.eq.s32.totalorder %s132_s26, 0  ;;  %p146_p2 = scmp.eq.s32.totalorder %s782_s22, 1 }
   0x7   : > { %p151_p3 = scmp.ne.s32.totalorder %s717_s19, %s713_s18  ;;  %p152_p4 = scmp.eq.s32.totalorder %s544_s23, 1 }
   0x8   : > { %s797_s27 = scalar_select %p133_p1, %s721_s20, %s135_s25  }
   0x9   : > { %p799_p5 = por %p146_p2, %p145_p0  ;;  %p803_p6 = por %p152_p4, %p151_p3 }
   0xa   : > { %p547_p7 = scmp.ge.s32.totalorder %s725_s21, 1  ;;  %p189_p8 = scmp.lt.s32.totalorder %s725_s21, 3 }
   0xc   : > { %p190_p9 = pnand %p547_p7, %p189_p8 }
   0xd   : > { %p216_p10 = scmp.lt.s32.totalorder (!%p190_p9), %s782_s22, 1  ;;  %s213_s6 = sand.u32 (!%p190_p9), 1, %s717_s19  }
   0xe   : > { %193 = sbr.rel (%p190_p9) target bundleno = 945 (0x3b1), region = 40  ;;  %s548_s7 = sshll.u32 (!%p190_p9), %s213_s6, 3 }
   0xf   : > { %s565_s8 = sshll.u32 (!%p190_p9), %s782_s22, 7  ;;  %s215_s9 = scalar_lea.vmem (!%p190_p9), [#allocation2], %s548_s7 }
  0x10   : > { %s485_s10 = sshll.u32 (!%p190_p9), %s215_s9, 4  ;;  %s865_s13 = scalar_lea.hbm (!%p190_p9), %s912_s5, %s565_s8  ;;  %s867_s10 = int_to_ptr.vmem [resolvable:$true] %s485_s10 }
  0x11   : > { %s665_s15 = scalar_lea.vmem (!%p190_p9), %s867_s10, 128 }
  0x12   : > { %p666_p11 = scmp.ne.s32.totalorder (!%p190_p9), %s867_s10, %s665_s15 }
  0x13   : > { %v647_v0 = vld [vmem:[%s908_s1 + $0x14] ss:$8 sps:$4 sm:$0xff]   ;;  %v649_v1 = vld [vmem:[%s908_s1 + $0x10] ss:$8 sps:$4 sm:$0xff]   ;;  %v727_v2 = vmov 0   ;;  %s217_s11 = scalar_select %p216_p10, %s782_s22, 1  ;;  %v228_v6 = vlaneseq }
  0x14   : > { %294 = vmatprep.mubr.bf16.mxu0 %v727_v2  ;;  %274 = vmatprep.subr.bf16.mxu0 %v647_v0  ;;  %v650_v3 = vld [vmem:[%s908_s1 + $0x4] ss:$8 sps:$4 sm:$0xff]   ;;  %v652_v4 = vld [vmem:[%s908_s1] ss:$8 sps:$4 sm:$0xff]   ;;  %vm258_vm0 = vcmask 261120   ;;  %vm303_vm1 = vcmask 31744   ;;  %p667_p12 = pnand %p666_p11, %p799_p5 }
  0x15   : > { %275 = vmatpush1.bf16.msra.mxu0 %v649_v1  ;;  %s549_s14 = sshll.u32 %s217_s11, 2  ;;  %v229_v7 = vshrl.u32 %v228_v6, 7  ;;  %v226_v9 = vld [vmem:[%s909_s2] sm:$0x3]  ;;  %vm320_vm2 = vcmask 1041408   ;;  %v728_v23 = vmov 0.0  }
  0x16   : > { %276 = vmatprep.subr.bf16.mxu0 %v650_v3  ;;  %s219_s17 = scalar_lea.vmem %s907_s0, %s549_s14  ;;  %v316_v22 = vld [vmem:[%s910_s3] sm:$0x3]  ;;  %vm729_vm3 = vmmov 0   ;;  %585 = vmatprep.subr.bf16.mxu1 %v728_v23  ;;  %v653_v25 = vld [vmem:[%s911_s4 + $0x38] sm:$0xff]   ;;  %v654_v26 = vld [vmem:[%s911_s4 + $0x30] sm:$0xff]   ;;  %s472_s14 = scalar_lea.sflag [#allocation3], %s213_s6 }
  0x17   : > { %v221_v5 = vld [vmem:[%s219_s17] sm:$0xf]  ;;  %v234_v8 = vsub.s32 1, %v229_v7  ;;  %v322_v24 = vsel %vm320_vm2, %v316_v22, 0  ;;  %601 = vmatprep.mubr.msk.bf16.mxu1 %vm729_vm3, %v728_v23  ;;  %586 = vmatpush3.bf16.msra.mxu1 %v653_v25  ;;  %v655_v27 = vld [vmem:[%s911_s4 + $0x28] sm:$0xff]   ;;  %v657_v29 = vld [vmem:[%s911_s4 + $0x18] sm:$0xff]   ;;  %p668_p13 = pneg %p667_p12 }
  0x18   : > { %587 = vmatprep.subr.bf16.mxu1 %v728_v23  ;;  %v656_v28 = vld [vmem:[%s911_s4 + $0x20] sm:$0xff]   ;;  %v658_v30 = vld [vmem:[%s911_s4 + $0x10] sm:$0xff]   ;;  %v659_v31 = vld [vmem:[%s911_s4 + $0x8] sm:$0xff]   ;;  %v230_v37 = vsub.s32 0, %v229_v7  ;;  %s730_s22 = smov [#allocation2]  }
  0x19   : > { %277 = vmatpush1.bf16.msra.mxu0 %v652_v4  ;;  %v235_v10 = vrot.slane %v226_v9, %v234_v8  ;;  %v660_v36 = vld [vmem:[%s911_s4] sm:$0xff]   ;;  %s669_s16 = sshll.u32 %s730_s22, 4  ;;  %s670_s16 = int_to_ptr.vmem [resolvable:$false] %s669_s16 }
  0x1a   : > { %579 = vmatprep.subr.bf16.mxu0 %v728_v23  ;;  %v231_v38 = vrot.slane %v226_v9, %v230_v37  ;;  %s671_s17 = scalar_lea.vmem %s670_s16, 256  ;;  %p672_p0 = scmp.lt.s32.totalorder %s867_s10, %s670_s16 }
  0x1b   : > { %588 = vmatpush3.bf16.msra.mxu1 %v654_v26  ;;  %p673_p1 = scmp.lt.s32.totalorder %s671_s17, %s665_s15 }
  0x1c   : > { %554 = vmatmul.mubr.msk.bf16.vlgmr.msra.gmra.mxu0 %vm258_vm0, %v221_v5  ;;  %589 = vmatprep.subr.bf16.mxu1 %v728_v23 }
  0x1d   : > { %581 = vmatprep.mubr.msk.bf16.mxu0 %vm729_vm3, %v728_v23  ;;  %580 = vmatpush3.bf16.msra.mxu0 %v322_v24  ;;  %p674_p2 = por %p673_p1, %p672_p0 }
  0x1f   : > { %590 = vmatpush3.bf16.msra.mxu1 %v655_v27  ;;  %p675_p3 = pnand %p674_p2, %p668_p13 }
  0x20   : > { %591 = vmatprep.subr.bf16.mxu1 %v728_v23 }
  0x23   : > { %592 = vmatpush3.bf16.msra.mxu1 %v656_v28 }
  0x24   : > { %593 = vmatprep.subr.bf16.mxu1 %v728_v23 }
  0x27   : > { %594 = vmatpush3.bf16.msra.mxu1 %v657_v29 }
  0x28   : > { %595 = vmatprep.subr.bf16.mxu1 %v728_v23 }
  0x2b   : > { %596 = vmatpush3.bf16.msra.mxu1 %v658_v30 }
  0x2c   : > { %597 = vmatprep.subr.bf16.mxu1 %v728_v23 }
  0x2f   : > { %598 = vmatpush3.bf16.msra.mxu1 %v659_v31 }
  0x30   : > { %599 = vmatprep.subr.bf16.mxu1 %v728_v23 }
  0x33   : > { %600 = vmatpush3.bf16.msra.mxu1 %v660_v36 }
  0xdc   : > { %v296_v11 = vpop.f32.mrf.mxu0 }
  0xdd   : > { %v297_v39 = vadd.f32 %v296_v11, %v231_v38 }
  0xde   : > { %v298_v12 = vpop.f32.mrf.mxu0 }
  0xdf   : > { %v299_v13 = vadd.f32 %v298_v12, %v235_v10 }
  0xe0   : > { %v300_v14 = vpop.f32.mrf.mxu0 }
  0xe1   : > { %v304_v15 = vsel %vm303_vm1, %v299_v13, -inf }
  0xe2   : > { %v301_v16 = vpop.f32.mrf.mxu0  ;;  %305 = vmax.xlane.f32.xlu0 %v304_v15 }
 0x16b   : > { %v306_v17 = vpop.xlane.xlu0 %305 }
 0x16c   : > { %v307_v18 = vsub.f32 %v299_v13, %v306_v17 }
 0x16e   : > { %v308_v19 = vmul.f32 1.442695, %v307_v18 }
 0x170   : > { %661 = vpow2.f32 %v308_v19 }
 0x17d   : > { %v662_v20 = vpop.eup %661 }
 0x17e   : > { %v310_v21 = vsel %vm303_vm1, %v662_v20, 0.0 }
 0x17f   : > { %311 = vadd.xlane.f32.xlu0 %v310_v21 }
 0x208   : > { %v312_v32 = vpop.xlane.xlu0 %311 }
 0x209   : > { %663 = vrcp.f32 %v312_v32 }
 0x216   : > { %v664_v33 = vpop.eup %663 }
 0x217   : > { %v314_v34 = vmul.f32 %v664_v33, %v662_v20 }
 0x219   : > { %v315_v35 = vpack.c.bf16 %v314_v34, %v314_v34 }
 0x21b   : > { %582 = vmatmul.mubr.msk.bf16.vlgmr.msra.gmra.mxu0 %vm303_vm1, %v315_v35 }
 0x2db   : > { %v358_v40 = vpop.f32.mrf.mxu0 }
 0x2dc   : > { %v364_v41 = vmul.f32 %v358_v40, %v297_v39 }
 0x2dd   : > { %v583_v42 = vpop.f32.mrf.mxu0 }
 0x2de   : > { %v365_v43 = vpack.c.bf16 %v364_v41, %v364_v41 }
 0x2df   : > { %v361_v44 = vpop.f32.mrf.mxu0 }
 0x2e0   : > { %602 = vmatmul.mubr.bf16.vlgmr.msra.gmra.mxu1 %v365_v43 }
 0x2e1   : > { %v584_v45 = vpop.f32.mrf.mxu0 }
 0x3a0   : > { %v464_v46 = vpop.f32.mrf.mxu1 }
 0x3a1   : > { %470 = vst.msk [vmem:[%s215_s9] sm:$0xff] %vm258_vm0, %v464_v46 }
 0x3a2   : > { %v603_v47 = vpop.f32.mrf.mxu1 }
 0x3a3   : > { %678 = shalt.err (!%p675_p3)
}
 0x3a4   : > { %s679_s23 = scalar_lea.hbm %s865_s13, 128  ;;  %s683_s30 = scalar_lea.hbm %s912_s5, 256 }
 0x3a5   : > { %p680_p4 = scmp.ne.s32.totalorder %s865_s13, %s679_s23  ;;  %p684_p9 = scmp.lt.s32.totalorder %s865_s13, %s912_s5 }
 0x3a6   : > { %p685_p10 = scmp.lt.s32.totalorder %s683_s30, %s679_s23 }
 0x3a7   : > { %p681_p7 = pnand %p680_p4, %p799_p5 }
 0x3a8   : > { %p686_p11 = por %p685_p10, %p684_p9 }
 0x3a9   : > { %p682_p8 = pneg %p681_p7 }
 0x3ab   : > { %p687_p12 = pnand %p686_p11, %p682_p8 }
 0x3ad   : > { %690 = shalt.err (!%p687_p12)
}
 0x3ae   : > { %605 = dma.vmem_to_hbm [thread:$0]  (%p799_p5), %s867_s10, 128, %s865_s13, %s472_s14   ;;  %v467_v48 = vpop.f32.mrf.mxu1 }
 0x3b0   : > { %v604_v49 = vpop.f32.mrf.mxu1 }
 0x3b1 PF: > { %p611_p13 = scmp.ge.s32.totalorder %s725_s21, 2  ;;  %s497_s8 = sand.u32 1, %s713_s18  }
 0x3b2   : > { %s498_s9 = scalar_lea.sflag [#allocation3], %s497_s8 }
 0x3b3   : > { %p608_p0 = pnand %p611_p13, %p803_p6 }
 0x3b5   : > { %p609_p1 = pneg %p608_p0 }
 0x3b7   : > { %708 = dma.done.wait (%p609_p1), %s498_s9, 128  }
 0x3b8   : > { %710 = vsyncadd (%p609_p1), %s498_s9, 4294967168  ;;  %p15_p5 = scmp.ge.s32.totalorder %s786_s24, 4   ;;  %s915_s18 = smov %s717_s19 }
 0x3b9   : > { %s916_s19 = smov %s721_s20  ;;  %s917_s20 = smov %s797_s27 }
 0x3ba   : > { %s918_s21 = smov %s786_s24  ;;  %17 = sbr.rel (!%p15_p5) target bundleno = 3 (0x3), region = 75 }
 0x3bf   :  { %503 = vsyncpa [#allocation3], 1 }
 0x3c0   :  { %505 = vsyncpa [#allocation3 + $0x1], 1 }

// kernel: tpu_custom_call.1
= control target key start
LH: loop header
LB: loop body
LE: loop exit
PB: predicated region body
PF: predicated region fallthrough
CT: control target
= control target key end

     0   :  { %10 = vsyncpa [#allocation3], 0  ;;  %s907_s0 = inlined_call_operand.vmem [shape: bf16[16,32], index: 0, kind: input, shape index: {}]   ;;  %s908_s1 = inlined_call_operand.vmem [shape: bf16[32,256], index: 1, kind: input, shape index: {}]   ;;  %s909_s2 = inlined_call_operand.vmem [shape: f32[1,256], index: 2, kind: input, shape index: {}]   ;;  %s910_s3 = inlined_call_operand.vmem [shape: bf16[4,128], index: 3, kind: input, shape index: {}]   ;;  %s911_s4 = inlined_call_operand.vmem [shape: bf16[128,32], index: 4, kind: input, shape index: {}]   ;;  %s912_s5 = inlined_call_operand.hbm [shape: f32[16,32], index: 5, kind: output, shape index: {}]  }
   0x1   :  { %12 = vsyncpa [#allocation3 + $0x1], 0  ;;  %s761_s18 = smov 0   ;;  %s763_s19 = smov 0  }
   0x2   :  { %s765_s20 = smov 0   ;;  %s767_s21 = smov 0  }
   0x3 LB: > { %s782_s22 = sadd.s32 4294967295, %s725_s21   ;;  %s544_s23 = sadd.s32 4294967294, %s725_s21   ;;  %s725_s21 = sphi %s767_s21, %s918_s21   ;;  %s721_s20 = sphi %s765_s20, %s917_s20   ;;  %s717_s19 = sphi %s763_s19, %s916_s19   ;;  %s713_s18 = sphi %s761_s18, %s915_s18  }
   0x4   : > { %s786_s24 = sadd.s32 1, %s725_s21   ;;  %s135_s25 = sadd.s32 1, %s721_s20 }
   0x5   : > { %s132_s26 = ssub.s32 %s725_s21, %s786_s24  ;;  %p145_p0 = scmp.ne.s32.totalorder %s721_s20, %s717_s19 }
   0x6   : > { %p133_p1 = scmp.eq.s32.totalorder %s132_s26, 0  ;;  %p146_p2 = scmp.eq.s32.totalorder %s782_s22, 1 }
   0x7   : > { %p151_p3 = scmp.ne.s32.totalorder %s717_s19, %s713_s18  ;;  %p152_p4 = scmp.eq.s32.totalorder %s544_s23, 1 }
   0x8   : > { %s797_s27 = scalar_select %p133_p1, %s721_s20, %s135_s25  }
   0x9   : > { %p799_p5 = por %p146_p2, %p145_p0  ;;  %p803_p6 = por %p152_p4, %p151_p3 }
   0xa   : > { %p547_p7 = scmp.ge.s32.totalorder %s725_s21, 1  ;;  %p189_p8 = scmp.lt.s32.totalorder %s725_s21, 3 }
   0xc   : > { %p190_p9 = pnand %p547_p7, %p189_p8 }
   0xd   : > { %p216_p10 = scmp.lt.s32.totalorder (!%p190_p9), %s782_s22, 1  ;;  %s213_s6 = sand.u32 (!%p190_p9), 1, %s717_s19  }
   0xe   : > { %193 = sbr.rel (%p190_p9) target bundleno = 945 (0x3b1), region = 40  ;;  %s548_s7 = sshll.u32 (!%p190_p9), %s213_s6, 3 }
   0xf   : > { %s565_s8 = sshll.u32 (!%p190_p9), %s782_s22, 7  ;;  %s215_s9 = scalar_lea.vmem (!%p190_p9), [#allocation2], %s548_s7 }
  0x10   : > { %s485_s10 = sshll.u32 (!%p190_p9), %s215_s9, 4  ;;  %s865_s13 = scalar_lea.hbm (!%p190_p9), %s912_s5, %s565_s8  ;;  %s867_s10 = int_to_ptr.vmem [resolvable:$true] %s485_s10 }
  0x11   : > { %s665_s15 = scalar_lea.vmem (!%p190_p9), %s867_s10, 128 }
  0x12   : > { %p666_p11 = scmp.ne.s32.totalorder (!%p190_p9), %s867_s10, %s665_s15 }
  0x13   : > { %v647_v0 = vld [vmem:[%s908_s1 + $0x14] ss:$8 sps:$4 sm:$0xff]   ;;  %v649_v1 = vld [vmem:[%s908_s1 + $0x10] ss:$8 sps:$4 sm:$0xff]   ;;  %v727_v2 = vmov 0   ;;  %s217_s11 = scalar_select %p216_p10, %s782_s22, 1  ;;  %v228_v6 = vlaneseq }
  0x14   : > { %294 = vmatprep.mubr.bf16.mxu0 %v727_v2  ;;  %274 = vmatprep.subr.bf16.mxu0 %v647_v0  ;;  %v650_v3 = vld [vmem:[%s908_s1 + $0x4] ss:$8 sps:$4 sm:$0xff]   ;;  %v652_v4 = vld [vmem:[%s908_s1] ss:$8 sps:$4 sm:$0xff]   ;;  %vm258_vm0 = vcmask 261120   ;;  %vm303_vm1 = vcmask 31744   ;;  %p667_p12 = pnand %p666_p11, %p799_p5 }
  0x15   : > { %275 = vmatpush1.bf16.msra.mxu0 %v649_v1  ;;  %s549_s14 = sshll.u32 %s217_s11, 2  ;;  %v229_v7 = vshrl.u32 %v228_v6, 7  ;;  %v226_v9 = vld [vmem:[%s909_s2] sm:$0x3]  ;;  %vm320_vm2 = vcmask 1041408   ;;  %v728_v23 = vmov 0.0  }
  0x16   : > { %276 = vmatprep.subr.bf16.mxu0 %v650_v3  ;;  %s219_s17 = scalar_lea.vmem %s907_s0, %s549_s14  ;;  %v316_v22 = vld [vmem:[%s910_s3] sm:$0x3]  ;;  %vm729_vm3 = vmmov 0   ;;  %585 = vmatprep.subr.bf16.mxu1 %v728_v23  ;;  %v653_v25 = vld [vmem:[%s911_s4 + $0x38] sm:$0xff]   ;;  %v654_v26 = vld [vmem:[%s911_s4 + $0x30] sm:$0xff]   ;;  %s472_s14 = scalar_lea.sflag [#allocation3], %s213_s6 }
  0x17   : > { %v221_v5 = vld [vmem:[%s219_s17] sm:$0xf]  ;;  %v234_v8 = vsub.s32 1, %v229_v7  ;;  %v322_v24 = vsel %vm320_vm2, %v316_v22, 0  ;;  %601 = vmatprep.mubr.msk.bf16.mxu1 %vm729_vm3, %v728_v23  ;;  %586 = vmatpush3.bf16.msra.mxu1 %v653_v25  ;;  %v655_v27 = vld [vmem:[%s911_s4 + $0x28] sm:$0xff]   ;;  %v657_v29 = vld [vmem:[%s911_s4 + $0x18] sm:$0xff]   ;;  %p668_p13 = pneg %p667_p12 }
  0x18   : > { %587 = vmatprep.subr.bf16.mxu1 %v728_v23  ;;  %v656_v28 = vld [vmem:[%s911_s4 + $0x20] sm:$0xff]   ;;  %v658_v30 = vld [vmem:[%s911_s4 + $0x10] sm:$0xff]   ;;  %v659_v31 = vld [vmem:[%s911_s4 + $0x8] sm:$0xff]   ;;  %v230_v37 = vsub.s32 0, %v229_v7  ;;  %s730_s22 = smov [#allocation2]  }
  0x19   : > { %277 = vmatpush1.bf16.msra.mxu0 %v652_v4  ;;  %v235_v10 = vrot.slane %v226_v9, %v234_v8  ;;  %v660_v36 = vld [vmem:[%s911_s4] sm:$0xff]   ;;  %s669_s16 = sshll.u32 %s730_s22, 4  ;;  %s670_s16 = int_to_ptr.vmem [resolvable:$false] %s669_s16 }
  0x1a   : > { %579 = vmatprep.subr.bf16.mxu0 %v728_v23  ;;  %v231_v38 = vrot.slane %v226_v9, %v230_v37  ;;  %s671_s17 = scalar_lea.vmem %s670_s16, 256  ;;  %p672_p0 = scmp.lt.s32.totalorder %s867_s10, %s670_s16 }
  0x1b   : > { %588 = vmatpush3.bf16.msra.mxu1 %v654_v26  ;;  %p673_p1 = scmp.lt.s32.totalorder %s671_s17, %s665_s15 }
  0x1c   : > { %554 = vmatmul.mubr.msk.bf16.vlgmr.msra.gmra.mxu0 %vm258_vm0, %v221_v5  ;;  %589 = vmatprep.subr.bf16.mxu1 %v728_v23 }
  0x1d   : > { %581 = vmatprep.mubr.msk.bf16.mxu0 %vm729_vm3, %v728_v23  ;;  %580 = vmatpush3.bf16.msra.mxu0 %v322_v24  ;;  %p674_p2 = por %p673_p1, %p672_p0 }
  0x1f   : > { %590 = vmatpush3.bf16.msra.mxu1 %v655_v27  ;;  %p675_p3 = pnand %p674_p2, %p668_p13 }
  0x20   : > { %591 = vmatprep.subr.bf16.mxu1 %v728_v23 }
  0x23   : > { %592 = vmatpush3.bf16.msra.mxu1 %v656_v28 }
  0x24   : > { %593 = vmatprep.subr.bf16.mxu1 %v728_v23 }
  0x27   : > { %594 = vmatpush3.bf16.msra.mxu1 %v657_v29 }
  0x28   : > { %595 = vmatprep.subr.bf16.mxu1 %v728_v23 }
  0x2b   : > { %596 = vmatpush3.bf16.msra.mxu1 %v658_v30 }
  0x2c   : > { %597 = vmatprep.subr.bf16.mxu1 %v728_v23 }
  0x2f   : > { %598 = vmatpush3.bf16.msra.mxu1 %v659_v31 }
  0x30   : > { %599 = vmatprep.subr.bf16.mxu1 %v728_v23 }
  0x33   : > { %600 = vmatpush3.bf16.msra.mxu1 %v660_v36 }
  0xdc   : > { %v296_v11 = vpop.f32.mrf.mxu0 }
  0xdd   : > { %v297_v39 = vadd.f32 %v296_v11, %v231_v38 }
  0xde   : > { %v298_v12 = vpop.f32.mrf.mxu0 }
  0xdf   : > { %v299_v13 = vadd.f32 %v298_v12, %v235_v10 }
  0xe0   : > { %v300_v14 = vpop.f32.mrf.mxu0 }
  0xe1   : > { %v304_v15 = vsel %vm303_vm1, %v299_v13, -inf }
  0xe2   : > { %v301_v16 = vpop.f32.mrf.mxu0  ;;  %305 = vmax.xlane.f32.xlu0 %v304_v15 }
 0x16b   : > { %v306_v17 = vpop.xlane.xlu0 %305 }
 0x16c   : > { %v307_v18 = vsub.f32 %v299_v13, %v306_v17 }
 0x16e   : > { %v308_v19 = vmul.f32 1.442695, %v307_v18 }
 0x170   : > { %661 = vpow2.f32 %v308_v19 }
 0x17d   : > { %v662_v20 = vpop.eup %661 }
 0x17e   : > { %v310_v21 = vsel %vm303_vm1, %v662_v20, 0.0 }
 0x17f   : > { %311 = vadd.xlane.f32.xlu0 %v310_v21 }
 0x208   : > { %v312_v32 = vpop.xlane.xlu0 %311 }
 0x209   : > { %663 = vrcp.f32 %v312_v32 }
 0x216   : > { %v664_v33 = vpop.eup %663 }
 0x217   : > { %v314_v34 = vmul.f32 %v664_v33, %v662_v20 }
 0x219   : > { %v315_v35 = vpack.c.bf16 %v314_v34, %v314_v34 }
 0x21b   : > { %582 = vmatmul.mubr.msk.bf16.vlgmr.msra.gmra.mxu0 %vm303_vm1, %v315_v35 }
 0x2db   : > { %v358_v40 = vpop.f32.mrf.mxu0 }
 0x2dc   : > { %v364_v41 = vmul.f32 %v358_v40, %v297_v39 }
 0x2dd   : > { %v583_v42 = vpop.f32.mrf.mxu0 }
 0x2de   : > { %v365_v43 = vpack.c.bf16 %v364_v41, %v364_v41 }
 0x2df   : > { %v361_v44 = vpop.f32.mrf.mxu0 }
 0x2e0   : > { %602 = vmatmul.mubr.bf16.vlgmr.msra.gmra.mxu1 %v365_v43 }
 0x2e1   : > { %v584_v45 = vpop.f32.mrf.mxu0 }
 0x3a0   : > { %v464_v46 = vpop.f32.mrf.mxu1 }
 0x3a1   : > { %470 = vst.msk [vmem:[%s215_s9] sm:$0xff] %vm258_vm0, %v464_v46 }
 0x3a2   : > { %v603_v47 = vpop.f32.mrf.mxu1 }
 0x3a3   : > { %678 = shalt.err (!%p675_p3)
}
 0x3a4   : > { %s679_s23 = scalar_lea.hbm %s865_s13, 128  ;;  %s683_s30 = scalar_lea.hbm %s912_s5, 256 }
 0x3a5   : > { %p680_p4 = scmp.ne.s32.totalorder %s865_s13, %s679_s23  ;;  %p684_p9 = scmp.lt.s32.totalorder %s865_s13, %s912_s5 }
 0x3a6   : > { %p685_p10 = scmp.lt.s32.totalorder %s683_s30, %s679_s23 }
 0x3a7   : > { %p681_p7 = pnand %p680_p4, %p799_p5 }
 0x3a8   : > { %p686_p11 = por %p685_p10, %p684_p9 }
 0x3a9   : > { %p682_p8 = pneg %p681_p7 }
 0x3ab   : > { %p687_p12 = pnand %p686_p11, %p682_p8 }
 0x3ad   : > { %690 = shalt.err (!%p687_p12)
}
 0x3ae   : > { %605 = dma.vmem_to_hbm [thread:$0]  (%p799_p5), %s867_s10, 128, %s865_s13, %s472_s14   ;;  %v467_v48 = vpop.f32.mrf.mxu1 }
 0x3b0   : > { %v604_v49 = vpop.f32.mrf.mxu1 }
 0x3b1 PF: > { %p611_p13 = scmp.ge.s32.totalorder %s725_s21, 2  ;;  %s497_s8 = sand.u32 1, %s713_s18  }
 0x3b2   : > { %s498_s9 = scalar_lea.sflag [#allocation3], %s497_s8 }
 0x3b3   : > { %p608_p0 = pnand %p611_p13, %p803_p6 }
 0x3b5   : > { %p609_p1 = pneg %p608_p0 }
 0x3b7   : > { %708 = dma.done.wait (%p609_p1), %s498_s9, 128  }
 0x3b8   : > { %710 = vsyncadd (%p609_p1), %s498_s9, 4294967168  ;;  %p15_p5 = scmp.ge.s32.totalorder %s786_s24, 4   ;;  %s915_s18 = smov %s717_s19 }
 0x3b9   : > { %s916_s19 = smov %s721_s20  ;;  %s917_s20 = smov %s797_s27 }
 0x3ba   : > { %s918_s21 = smov %s786_s24  ;;  %17 = sbr.rel (!%p15_p5) target bundleno = 3 (0x3), region = 75 }
 0x3bf   :  { %503 = vsyncpa [#allocation3], 1 }
 0x3c0   :  { %505 = vsyncpa [#allocation3 + $0x1], 1 }

</bundles_post_ra>
